<compile_context>
chip_gen: v7x
topology: tpu7x:2x2x1
jax: 0.10.0
libtpu: 0.0.40
codegen_flags: <defaults>
</compile_context>

<pallas_src>
import jax
import jax.numpy as jnp
from jax import lax
from jax.experimental import pallas as pl
from jax.experimental.pallas import tpu as pltpu

H1, H2 = 400, 300          # logical hidden widths (as in the PyTorch module)
H1P, H2P = 512, 384        # lane-padded hidden widths (multiples of 128)


def _round_up(x, m):
    return (x + m - 1) // m * m


def critic_kernel(s_ref, a_ref, w1_ref, b1_ref, w2x_ref, w2a_ref, b2_ref,
                  w3_ref, b3_ref, o_ref):
    # fc1 + ReLU : (TB, S) @ (S, H1P) -> (TB, H1P), f32 accumulation on MXU.
    x1 = jnp.dot(s_ref[...].astype(jnp.bfloat16), w1_ref[...],
                 preferred_element_type=jnp.float32) + b1_ref[...]
    x1 = jnp.maximum(x1, 0.0)

    # fc2 on concat([x1, action], 1)  ==  x1 @ W2[:400] + action @ W2[400:]
    h2 = (jnp.dot(x1.astype(jnp.bfloat16), w2x_ref[...],
                  preferred_element_type=jnp.float32)
          + jnp.dot(a_ref[...].astype(jnp.bfloat16), w2a_ref[...],
                    preferred_element_type=jnp.float32)
          + b2_ref[...])
    x2 = jnp.maximum(h2, 0.0)

    # fc3: w3 (1, H2P) @ x2^T -> (1, TB).  Lane-dense row output; the M=1
    # matmul with a transposed RHS is the standard "A @ B.T" MXU pattern.
    q = lax.dot_general(
        w3_ref[...], x2.astype(jnp.bfloat16),
        dimension_numbers=(((1,), (1,)), ((), ())),
        preferred_element_type=jnp.float32)            # (1, TB)
    o_ref[...] = q + b3_ref[0, 0]


def critic_forward(state, action, kparams, *, block_b=1024):
    """state: (B, state_dim) f32, action: (B, action_dim) f32 -> (B, 1) f32."""
    B, S = state.shape
    A = action.shape[1]
    w1, b1, w2x, w2a, b2, w3, b3 = kparams

    if B <= 128:
        # Single exact tile; no padding, block == full batch.
        TB = B
    else:
        # Big, lane-aligned (multiple-of-128) tile, capped so the grid has at
        # least 2 steps -> both TensorCores engage on v7x via "parallel".
        TB = min(block_b, _round_up(pl.cdiv(B, 2), 128))
    grid_n = pl.cdiv(B, TB)

    def batch_spec(d):
        return pl.BlockSpec((TB, d), lambda i: (i, 0))

    def const_spec(shp):
        # Same block index every grid step -> weight stays resident in VMEM.
        return pl.BlockSpec(shp, lambda i: (0, 0))

    out = pl.pallas_call(
        critic_kernel,
        out_shape=jax.ShapeDtypeStruct((1, grid_n * TB), jnp.float32),
        grid_spec=pltpu.PrefetchScalarGridSpec(
            num_scalar_prefetch=0,
            grid=(grid_n,),
            in_specs=[
                batch_spec(S),                 # state   (TB, S)
                batch_spec(A),                 # action  (TB, A)
                const_spec((S, H1P)),          # w1      bf16
                const_spec((1, H1P)),          # b1      f32
                const_spec((H1P, H2P)),        # w2x     bf16
                const_spec((A, H2P)),          # w2a     bf16
                const_spec((1, H2P)),          # b2      f32
                const_spec((1, H2P)),          # w3 row  bf16
                pl.BlockSpec((1, 1), lambda i: (0, 0),
                             memory_space=pltpu.MemorySpace.SMEM),  # b3 scalar
            ],
            out_specs=pl.BlockSpec((1, TB), lambda i: (0, i)),
        ),
        compiler_params=pltpu.CompilerParams(
            dimension_semantics=("parallel",),
            vmem_limit_bytes=64 * 1024 * 1024),
    )(state, action, w1, b1, w2x, w2a, b2, w3, b3)

    # Lane-dense (1, grid_n*TB) -> (B, 1); the last tile's out-of-range
    # columns (garbage from the partial edge block) are sliced away here.
    return out[0, :B].reshape(B, 1)


def init_params(key, state_dim, action_dim):
    """PyTorch-Linear-like uniform init; weights stored as (in, out)."""
    ks = jax.random.split(key, 6)

    def lin(kw, kb, fan_in, fan_out):
        bound = float(fan_in) ** -0.5
        w = jax.random.uniform(kw, (fan_in, fan_out), jnp.float32, -bound, bound)
        b = jax.random.uniform(kb, (fan_out,), jnp.float32, -bound, bound)
        return w, b

    w1, b1 = lin(ks[0], ks[1], state_dim, H1)
    w2, b2 = lin(ks[2], ks[3], H1 + action_dim, H2)
    w3, b3 = lin(ks[4], ks[5], H2, 1)
    return (w1, b1, w2, b2, w3, b3)


def prepare_params(params, state_dim, action_dim):
    """Split fc2, zero-pad hidden dims to lane multiples, cast weights to bf16.

    Padding is exact: extra rows/cols and bias entries are zero, so the padded
    network computes the same function as the original on the real outputs.
    """
    w1, b1, w2, b2, w3, b3 = params
    bf16 = jnp.bfloat16
    w1p = jnp.zeros((state_dim, H1P), jnp.float32).at[:, :H1].set(w1).astype(bf16)
    b1p = jnp.zeros((1, H1P), jnp.float32).at[0, :H1].set(b1)
    w2x, w2a = w2[:H1], w2[H1:]
    w2xp = jnp.zeros((H1P, H2P), jnp.float32).at[:H1, :H2].set(w2x).astype(bf16)
    w2ap = jnp.zeros((action_dim, H2P), jnp.float32).at[:, :H2].set(w2a).astype(bf16)
    b2p = jnp.zeros((1, H2P), jnp.float32).at[0, :H2].set(b2)
    w3p = jnp.zeros((1, H2P), jnp.float32).at[0, :H2].set(w3[:, 0]).astype(bf16)
    b3p = b3.reshape(1, 1).astype(jnp.float32)
    return (w1p, b1p, w2xp, w2ap, b2p, w3p, b3p)


def critic_ref(state, action, params):
    """Plain-JAX f32 reference (exactly the PyTorch forward)."""
    w1, b1, w2, b2, w3, b3 = params
    x = jnp.maximum(state @ w1 + b1, 0.0)
    x = jnp.maximum(jnp.concatenate([x, action], axis=1) @ w2 + b2, 0.0)
    return x @ w3 + b3


if __name__ == "__main__":
    key = jax.random.PRNGKey(0)
    k_p, k_s, k_a, k_s2, k_a2 = jax.random.split(key, 5)

    state_dim, action_dim = 32, 8
    params = init_params(k_p, state_dim, action_dim)
    kparams = prepare_params(params, state_dim, action_dim)

    # Small-batch check: single exact tile (TB = B = 8), no padding anywhere.
    B = 8
    state = jax.random.normal(k_s, (B, state_dim), jnp.float32)
    action = jax.random.normal(k_a, (B, action_dim), jnp.float32)
    out = jax.block_until_ready(critic_forward(state, action, kparams))
    ref = critic_ref(state, action, params)
    assert out.shape == (B, 1)
    assert jnp.allclose(out, ref, atol=1e-2, rtol=1e-2), \
        float(jnp.max(jnp.abs(out - ref)))

    # Ragged batch: TB=256, 2 grid steps ("parallel" -> both TCs on v7x),
    # partial edge block for rows 256..299 with NO wrapper-side padding,
    # resident-weight constant index_maps, lane-dense (1, TB) output blocks.
    B2 = 300
    state2 = jax.random.normal(k_s2, (B2, state_dim), jnp.float32)
    action2 = jax.random.normal(k_a2, (B2, action_dim), jnp.float32)
    out2 = jax.block_until_ready(critic_forward(state2, action2, kparams))
    ref2 = critic_ref(state2, action2, params)
    assert out2.shape == (B2, 1)
    assert jnp.allclose(out2, ref2, atol=1e-2, rtol=1e-2), \
        float(jnp.max(jnp.abs(out2 - ref2)))

    print("KERNEL_OK")
</pallas_src>

<mosaic_0001>
module attributes {stable_mosaic.version = 11 : i64} {
  func.func @critic_kernel(%arg0: i32, %arg1: memref<8x32xf32, #tpu.memory_space<vmem>>, %arg2: memref<8x8xf32, #tpu.memory_space<vmem>>, %arg3: memref<32x512xbf16, #tpu.memory_space<vmem>>, %arg4: memref<1x512xf32, #tpu.memory_space<vmem>>, %arg5: memref<512x384xbf16, #tpu.memory_space<vmem>>, %arg6: memref<8x384xbf16, #tpu.memory_space<vmem>>, %arg7: memref<1x384xf32, #tpu.memory_space<vmem>>, %arg8: memref<1x384xbf16, #tpu.memory_space<vmem>>, %arg9: memref<1x1xf32, #tpu.memory_space<smem>>, %arg10: memref<1x8xf32, #tpu.memory_space<vmem>>) attributes {dimension_semantics = [#tpu.dimension_semantics<parallel>], iteration_bounds = array<i64: 1>, scalar_prefetch = 0 : i64, scratch_operands = 0 : i64, tpu.core_type = #tpu.core_type<tc>, window_params = [{transform_indices = @transform_0, window_bounds = array<i64: 8, 32>}, {transform_indices = @transform_1, window_bounds = array<i64: 8, 8>}, {pipeline_mode = #tpu.pipeline_mode<synchronous>, transform_indices = @transform_2, window_bounds = array<i64: 32, 512>}, {pipeline_mode = #tpu.pipeline_mode<synchronous>, transform_indices = @transform_3, window_bounds = array<i64: 1, 512>}, {pipeline_mode = #tpu.pipeline_mode<synchronous>, transform_indices = @transform_4, window_bounds = array<i64: 512, 384>}, {pipeline_mode = #tpu.pipeline_mode<synchronous>, transform_indices = @transform_5, window_bounds = array<i64: 8, 384>}, {pipeline_mode = #tpu.pipeline_mode<synchronous>, transform_indices = @transform_6, window_bounds = array<i64: 1, 384>}, {pipeline_mode = #tpu.pipeline_mode<synchronous>, transform_indices = @transform_7, window_bounds = array<i64: 1, 384>}, {transform_indices = @transform_8, window_bounds = array<i64: 1, 1>}, {transform_indices = @transform_9, window_bounds = array<i64: 1, 8>}]} {
    %c0 = arith.constant 0 : index
    %c0_0 = arith.constant 0 : index
    %0 = vector.load %arg1[%c0, %c0_0] : memref<8x32xf32, #tpu.memory_space<vmem>>, vector<8x32xf32>
    %1 = arith.truncf %0 : vector<8x32xf32> to vector<8x32xbf16>
    %c0_1 = arith.constant 0 : index
    %c0_2 = arith.constant 0 : index
    %2 = vector.load %arg3[%c0_1, %c0_2] : memref<32x512xbf16, #tpu.memory_space<vmem>>, vector<32x512xbf16>
    %cst = arith.constant dense<0.000000e+00> : vector<8x512xf32>
    %3 = tpu.matmul %1, %2, %cst {dimension_numbers = #tpu.dot_dimension_numbers<[1], [0], [0], [1], [0, 0, 1, 1], [], []>} : vector<8x32xbf16>, vector<32x512xbf16>, vector<8x512xf32> -> vector<8x512xf32>
    %c0_3 = arith.constant 0 : index
    %c0_4 = arith.constant 0 : index
    %4 = vector.load %arg4[%c0_3, %c0_4] : memref<1x512xf32, #tpu.memory_space<vmem>>, vector<1x512xf32>
    %5 = vector.broadcast %4 : vector<1x512xf32> to vector<8x512xf32>
    %6 = arith.addf %3, %5 : vector<8x512xf32>
    %cst_5 = arith.constant 0.000000e+00 : f32
    %7 = vector.broadcast %cst_5 : f32 to vector<8x512xf32>
    %8 = arith.maximumf %6, %7 : vector<8x512xf32>
    %9 = arith.truncf %8 : vector<8x512xf32> to vector<8x512xbf16>
    %c0_6 = arith.constant 0 : index
    %c0_7 = arith.constant 0 : index
    %10 = vector.load %arg5[%c0_6, %c0_7] : memref<512x384xbf16, #tpu.memory_space<vmem>>, vector<512x384xbf16>
    %cst_8 = arith.constant dense<0.000000e+00> : vector<8x384xf32>
    %11 = tpu.matmul %9, %10, %cst_8 {dimension_numbers = #tpu.dot_dimension_numbers<[1], [0], [0], [1], [0, 0, 1, 1], [], []>} : vector<8x512xbf16>, vector<512x384xbf16>, vector<8x384xf32> -> vector<8x384xf32>
    %c0_9 = arith.constant 0 : index
    %c0_10 = arith.constant 0 : index
    %12 = vector.load %arg2[%c0_9, %c0_10] : memref<8x8xf32, #tpu.memory_space<vmem>>, vector<8x8xf32>
    %13 = arith.truncf %12 : vector<8x8xf32> to vector<8x8xbf16>
    %c0_11 = arith.constant 0 : index
    %c0_12 = arith.constant 0 : index
    %14 = vector.load %arg6[%c0_11, %c0_12] : memref<8x384xbf16, #tpu.memory_space<vmem>>, vector<8x384xbf16>
    %cst_13 = arith.constant dense<0.000000e+00> : vector<8x384xf32>
    %15 = tpu.matmul %13, %14, %cst_13 {dimension_numbers = #tpu.dot_dimension_numbers<[1], [0], [0], [1], [0, 0, 1, 1], [], []>} : vector<8x8xbf16>, vector<8x384xbf16>, vector<8x384xf32> -> vector<8x384xf32>
    %16 = arith.addf %11, %15 : vector<8x384xf32>
    %c0_14 = arith.constant 0 : index
    %c0_15 = arith.constant 0 : index
    %17 = vector.load %arg7[%c0_14, %c0_15] : memref<1x384xf32, #tpu.memory_space<vmem>>, vector<1x384xf32>
    %18 = vector.broadcast %17 : vector<1x384xf32> to vector<8x384xf32>
    %19 = arith.addf %16, %18 : vector<8x384xf32>
    %cst_16 = arith.constant 0.000000e+00 : f32
    %20 = vector.broadcast %cst_16 : f32 to vector<8x384xf32>
    %21 = arith.maximumf %19, %20 : vector<8x384xf32>
    %c0_17 = arith.constant 0 : index
    %c0_18 = arith.constant 0 : index
    %22 = vector.load %arg8[%c0_17, %c0_18] : memref<1x384xbf16, #tpu.memory_space<vmem>>, vector<1x384xbf16>
    %23 = arith.truncf %21 : vector<8x384xf32> to vector<8x384xbf16>
    %cst_19 = arith.constant dense<0.000000e+00> : vector<1x8xf32>
    %24 = tpu.matmul %22, %23, %cst_19 {dimension_numbers = #tpu.dot_dimension_numbers<[1], [1], [0], [0], [0, 0, 1, 0], [], []>} : vector<1x384xbf16>, vector<8x384xbf16>, vector<1x8xf32> -> vector<1x8xf32>
    %c0_20 = arith.constant 0 : index
    %c0_21 = arith.constant 0 : index
    %25 = memref.load %arg9[%c0_20, %c0_21] : memref<1x1xf32, #tpu.memory_space<smem>>
    %26 = vector.broadcast %25 : f32 to vector<1x8xf32>
    %27 = arith.addf %24, %26 : vector<1x8xf32>
    %c0_22 = arith.constant 0 : index
    %c0_23 = arith.constant 0 : index
    %28 = vector.load %arg10[%c0_22, %c0_23] : memref<1x8xf32, #tpu.memory_space<vmem>>, vector<1x8xf32>
    tpu.vector_store %arg10[%c0_22, %c0_23], %27 {strides = array<i32>} : memref<1x8xf32, #tpu.memory_space<vmem>>, vector<1x8xf32>,
    return
  }
  func.func @transform_0(%arg0: i32) -> (i32, i32) {
    %c0_i32 = arith.constant 0 : i32
    %c0_i32_0 = arith.constant 0 : i32
    return %arg0, %c0_i32 : i32, i32
  }
  func.func @transform_1(%arg0: i32) -> (i32, i32) {
    %c0_i32 = arith.constant 0 : i32
    %c0_i32_0 = arith.constant 0 : i32
    return %arg0, %c0_i32 : i32, i32
  }
  func.func @transform_2(%arg0: i32) -> (i32, i32) {
    %c0_i32 = arith.constant 0 : i32
    %c0_i32_0 = arith.constant 0 : i32
    %c0_i32_1 = arith.constant 0 : i32
    return %c0_i32, %c0_i32_0 : i32, i32
  }
  func.func @transform_3(%arg0: i32) -> (i32, i32) {
    %c0_i32 = arith.constant 0 : i32
    %c0_i32_0 = arith.constant 0 : i32
    %c0_i32_1 = arith.constant 0 : i32
    return %c0_i32, %c0_i32_0 : i32, i32
  }
  func.func @transform_4(%arg0: i32) -> (i32, i32) {
    %c0_i32 = arith.constant 0 : i32
    %c0_i32_0 = arith.constant 0 : i32
    %c0_i32_1 = arith.constant 0 : i32
    return %c0_i32, %c0_i32_0 : i32, i32
  }
  func.func @transform_5(%arg0: i32) -> (i32, i32) {
    %c0_i32 = arith.constant 0 : i32
    %c0_i32_0 = arith.constant 0 : i32
    %c0_i32_1 = arith.constant 0 : i32
    return %c0_i32, %c0_i32_0 : i32, i32
  }
  func.func @transform_6(%arg0: i32) -> (i32, i32) {
    %c0_i32 = arith.constant 0 : i32
    %c0_i32_0 = arith.constant 0 : i32
    %c0_i32_1 = arith.constant 0 : i32
    return %c0_i32, %c0_i32_0 : i32, i32
  }
  func.func @transform_7(%arg0: i32) -> (i32, i32) {
    %c0_i32 = arith.constant 0 : i32
    %c0_i32_0 = arith.constant 0 : i32
    %c0_i32_1 = arith.constant 0 : i32
    return %c0_i32, %c0_i32_0 : i32, i32
  }
  func.func @transform_8(%arg0: i32) -> (i32, i32) {
    %c0_i32 = arith.constant 0 : i32
    %c0_i32_0 = arith.constant 0 : i32
    %c0_i32_1 = arith.constant 0 : i32
    return %c0_i32, %c0_i32_0 : i32, i32
  }
  func.func @transform_9(%arg0: i32) -> (i32, i32) {
    %c0_i32 = arith.constant 0 : i32
    %c0_i32_0 = arith.constant 0 : i32
    return %c0_i32, %arg0 : i32, i32
  }
}

</mosaic_0001>

<bundles_post_ra>
// kernel: tpu_custom_call.1
= control target key start
LH: loop header
LB: loop body
LE: loop exit
PB: predicated region body
PF: predicated region fallthrough
CT: control target
= control target key end

     0   :  { %15 = vsyncpa [#allocation4], 0  ;;  %s2135_s0 = inlined_call_operand.hbm [shape: f32[8,32], index: 0, kind: input, shape index: {}]   ;;  %s2136_s1 = inlined_call_operand.hbm [shape: f32[8,8], index: 1, kind: input, shape index: {}]   ;;  %s2137_s2 = inlined_call_operand.hbm [shape: bf16[32,512], index: 2, kind: input, shape index: {}]   ;;  %s2138_s3 = inlined_call_operand.hbm [shape: f32[1,512], index: 3, kind: input, shape index: {}]   ;;  %s2139_s4 = inlined_call_operand.hbm [shape: bf16[512,384], index: 4, kind: input, shape index: {}]   ;;  %s2140_s5 = inlined_call_operand.hbm [shape: bf16[8,384], index: 5, kind: input, shape index: {}]   ;;  %s2141_s6 = inlined_call_operand.hbm [shape: f32[1,384], index: 6, kind: input, shape index: {}]   ;;  %s2142_s7 = inlined_call_operand.hbm [shape: bf16[1,384], index: 7, kind: input, shape index: {}]   ;;  %s2143_s8 = inlined_call_operand.<no memory space> [shape: f32[1,1], index: 8, kind: input, shape index: {}]   ;;  %s2144_s9 = inlined_call_operand.hbm [shape: f32[1,8], index: 9, kind: output, shape index: {}]  }
   0x1   :  { %16 = vsyncpa [#allocation7], 0 }
   0x2   :  { %17 = vsyncpa [#allocation10], 0 }
   0x3   :  { %18 = vsyncpa [#allocation13], 0 }
   0x4   :  { %19 = vsyncpa [#allocation16], 0 }
   0x5   :  { %20 = vsyncpa [#allocation5], 0  ;;  %s1912_s30 = smov [#allocation6]   ;;  %s1913_s11 = smov [#allocation9]  }
   0x6   :  { %s37_s10 = sshll.u32 %s1912_s30, 4  ;;  %s59_s12 = sshll.u32 %s1913_s11, 4  ;;  %s38_s10 = int_to_ptr.vmem [resolvable:$true] %s37_s10  ;;  %s60_s12 = int_to_ptr.vmem [resolvable:$true] %s59_s12 }
   0x7   :  { %s1702_s15 = scalar_lea.hbm %s2136_s1, 128 }
   0x8   :  { %p1703_p0 = scmp.ne.s32.totalorder %s2136_s1, %s1702_s15  ;;  %p1706_p1 = scmp.lt.u32.totalorder %s1702_s15, %s2136_s1 }
   0xa   :  { %p1708_p2 = pnand %p1706_p1, %p1703_p0 }
   0xc   :  { %1711 = shalt.err (!%p1708_p2)
}
   0xd   :  { %s1712_s20 = scalar_lea.vmem %s38_s10, 128  ;;  %p1717_p4 = scmp.lt.s32.totalorder %s38_s10, %s38_s10 }
   0xe   :  { %p1713_p3 = scmp.ne.s32.totalorder %s38_s10, %s1712_s20  ;;  %p1718_p5 = scmp.lt.s32.totalorder %s1712_s20, %s1712_s20 }
  0x10   :  { %p1719_p6 = por %p1718_p5, %p1717_p4 }
  0x12   :  { %p1720_p7 = pnand %p1719_p6, %p1713_p3 }
  0x14   :  { %1723 = shalt.err (!%p1720_p7)
}
  0x15   :  { %40 = dma.hbm_to_vmem [thread:$0]  %s2136_s1, 128, %s38_s10, [#allocation7]  }
  0x16   :  { %s1724_s25 = scalar_lea.hbm %s2138_s3, 64 }
  0x17   :  { %p1725_p8 = scmp.ne.s32.totalorder %s2138_s3, %s1724_s25  ;;  %p1728_p9 = scmp.lt.u32.totalorder %s1724_s25, %s2138_s3 }
  0x19   :  { %p1730_p10 = pnand %p1728_p9, %p1725_p8 }
  0x1b   :  { %1733 = shalt.err (!%p1730_p10)
}
  0x1c   :  { %s1734_s30 = scalar_lea.vmem %s60_s12, 64  ;;  %p1739_p12 = scmp.lt.s32.totalorder %s60_s12, %s60_s12 }
  0x1d   :  { %p1735_p11 = scmp.ne.s32.totalorder %s60_s12, %s1734_s30  ;;  %p1740_p13 = scmp.lt.s32.totalorder %s1734_s30, %s1734_s30 }
  0x1f   :  { %p1741_p0 = por %p1740_p13, %p1739_p12 }
  0x21   :  { %p1742_p1 = pnand %p1741_p0, %p1735_p11 }
  0x23   :  { %1745 = shalt.err (!%p1742_p1)
}
  0x24   :  { %62 = dma.hbm_to_vmem [thread:$0]  %s2138_s3, 64, %s60_s12, [#allocation10]  }
  0x25   :  { %s1914_s11 = smov [#allocation12]   ;;  %s1915_s14 = smov [#allocation3]  }
  0x26   :  { %s81_s13 = sshll.u32 %s1914_s11, 4  ;;  %s27_s15 = sshll.u32 %s1915_s14, 4  ;;  %s82_s13 = int_to_ptr.vmem [resolvable:$true] %s81_s13  ;;  %s28_s15 = int_to_ptr.vmem [resolvable:$true] %s27_s15 }
  0x27   :  { %s1746_s18 = scalar_lea.hbm %s2140_s5, 192 }
  0x28   :  { %p1747_p2 = scmp.ne.s32.totalorder %s2140_s5, %s1746_s18  ;;  %p1750_p3 = scmp.lt.u32.totalorder %s1746_s18, %s2140_s5 }
  0x2a   :  { %p1752_p4 = pnand %p1750_p3, %p1747_p2 }
  0x2c   :  { %1755 = shalt.err (!%p1752_p4)
}
  0x2d   :  { %s1756_s3 = scalar_lea.vmem %s82_s13, 192  ;;  %p1761_p6 = scmp.lt.s32.totalorder %s82_s13, %s82_s13 }
  0x2e   :  { %p1757_p5 = scmp.ne.s32.totalorder %s82_s13, %s1756_s3  ;;  %p1762_p7 = scmp.lt.s32.totalorder %s1756_s3, %s1756_s3 }
  0x30   :  { %p1763_p8 = por %p1762_p7, %p1761_p6 }
  0x32   :  { %p1764_p9 = pnand %p1763_p8, %p1757_p5 }
  0x34   :  { %1767 = shalt.err (!%p1764_p9)
}
  0x35   :  { %84 = dma.hbm_to_vmem [thread:$0]  %s2140_s5, 192, %s82_s13, [#allocation13]  }
  0x36   :  { %s1768_s26 = scalar_lea.hbm %s2135_s0, 128 }
  0x37   :  { %p1769_p10 = scmp.ne.s32.totalorder %s2135_s0, %s1768_s26  ;;  %p1772_p11 = scmp.lt.u32.totalorder %s1768_s26, %s2135_s0 }
  0x39   :  { %p1774_p12 = pnand %p1772_p11, %p1769_p10 }
  0x3b   :  { %1777 = shalt.err (!%p1774_p12)
}
  0x3c   :  { %s1778_s1 = scalar_lea.vmem %s28_s15, 128  ;;  %p1783_p0 = scmp.lt.s32.totalorder %s28_s15, %s28_s15 }
  0x3d   :  { %p1779_p13 = scmp.ne.s32.totalorder %s28_s15, %s1778_s1  ;;  %p1784_p1 = scmp.lt.s32.totalorder %s1778_s1, %s1778_s1 }
  0x3f   :  { %p1785_p2 = por %p1784_p1, %p1783_p0 }
  0x41   :  { %p1786_p3 = pnand %p1785_p2, %p1779_p13 }
  0x43   :  { %1789 = shalt.err (!%p1786_p3)
}
  0x44   :  { %30 = dma.hbm_to_vmem [thread:$0]  %s2135_s0, 128, %s28_s15, [#allocation4]  }
  0x45   :  { %s1916_s11 = smov [#allocation8]   ;;  %s1790_s17 = scalar_lea.hbm %s2137_s2, 1024 }
  0x46   :  { %s46_s13 = sshll.u32 %s1916_s11, 4  ;;  %p1791_p4 = scmp.ne.s32.totalorder %s2137_s2, %s1790_s17  ;;  %s47_s13 = int_to_ptr.vmem [resolvable:$true] %s46_s13 }
  0x47   :  { %p1794_p5 = scmp.lt.u32.totalorder %s1790_s17, %s2137_s2 }
  0x49   :  { %p1796_p6 = pnand %p1794_p5, %p1791_p4 }
  0x4b   :  { %1799 = shalt.err (!%p1796_p6)
}
  0x4c   :  { %s1800_s22 = scalar_lea.vmem %s47_s13, 1024  ;;  %p1805_p8 = scmp.lt.s32.totalorder %s47_s13, %s47_s13 }
  0x4d   :  { %p1801_p7 = scmp.ne.s32.totalorder %s47_s13, %s1800_s22  ;;  %p1806_p9 = scmp.lt.s32.totalorder %s1800_s22, %s1800_s22 }
  0x4f   :  { %p1807_p10 = por %p1806_p9, %p1805_p8 }
  0x51   :  { %p1808_p11 = pnand %p1807_p10, %p1801_p7 }
  0x53   :  { %1811 = shalt.err (!%p1808_p11)
}
  0x54   :  { %s1917_s0 = smov 256   ;;  %s1918_s15 = smov 16  }
  0x55   :  { %52 = dma.hbm_to_vmem [thread:$0]  %s2137_s2, 1024, %s47_s13, [#allocation7], %s1917_s0, %s1917_s0, %s1918_s15  }
  0x56   :  { %s1919_s23 = smov [#allocation11]   ;;  %s1812_s27 = scalar_lea.hbm %s2139_s4, 12288 }
  0x57   :  { %s68_s24 = sshll.u32 %s1919_s23, 4  ;;  %p1813_p12 = scmp.ne.s32.totalorder %s2139_s4, %s1812_s27  ;;  %s69_s24 = int_to_ptr.vmem [resolvable:$true] %s68_s24 }
  0x58   :  { %p1816_p13 = scmp.lt.u32.totalorder %s1812_s27, %s2139_s4 }
  0x5a   :  { %p1818_p0 = pnand %p1816_p13, %p1813_p12 }
  0x5c   :  { %1821 = shalt.err (!%p1818_p0)
}
  0x5d   :  { %s1822_s5 = scalar_lea.vmem %s69_s24, 12288  ;;  %p1827_p2 = scmp.lt.s32.totalorder %s69_s24, %s69_s24 }
  0x5e   :  { %p1823_p1 = scmp.ne.s32.totalorder %s69_s24, %s1822_s5  ;;  %p1828_p3 = scmp.lt.s32.totalorder %s1822_s5, %s1822_s5 }
  0x60   :  { %p1829_p4 = por %p1828_p3, %p1827_p2 }
  0x62   :  { %p1830_p5 = pnand %p1829_p4, %p1823_p1 }
  0x64   :  { %1833 = shalt.err (!%p1830_p5)
}
  0x65   :  { %s1920_s2 = smov 192   ;;  %s1921_s10 = smov 12  }
  0x66   :  { %74 = dma.hbm_to_vmem [thread:$0]  %s2139_s4, 12288, %s69_s24, [#allocation10], %s1920_s2, %s1920_s2, %s1921_s10  }
  0x67   :  { %s1922_s14 = smov [#allocation14]   ;;  %s1923_s17 = smov [#allocation15]  }
  0x68   :  { %s91_s16 = sshll.u32 %s1922_s14, 4  ;;  %s101_s18 = sshll.u32 %s1923_s17, 4  ;;  %s92_s16 = int_to_ptr.vmem [resolvable:$true] %s91_s16  ;;  %s102_s18 = int_to_ptr.vmem [resolvable:$true] %s101_s18 }
  0x69   :  { %s1834_s21 = scalar_lea.hbm %s2141_s6, 48 }
  0x6a   :  { %p1835_p6 = scmp.ne.s32.totalorder %s2141_s6, %s1834_s21  ;;  %p1838_p7 = scmp.lt.u32.totalorder %s1834_s21, %s2141_s6 }
  0x6c   :  { %p1840_p8 = pnand %p1838_p7, %p1835_p6 }
  0x6e   :  { %1843 = shalt.err (!%p1840_p8)
}
  0x6f   :  { %s1844_s4 = scalar_lea.vmem %s92_s16, 48  ;;  %s1848_s12 = scalar_lea.vmem %s92_s16, 64 }
  0x70   :  { %p1845_p9 = scmp.ne.s32.totalorder %s92_s16, %s1844_s4  ;;  %p1849_p10 = scmp.lt.s32.totalorder %s92_s16, %s92_s16 }
  0x71   :  { %p1850_p11 = scmp.lt.s32.totalorder %s1848_s12, %s1844_s4 }
  0x73   :  { %p1851_p12 = por %p1850_p11, %p1849_p10 }
  0x75   :  { %p1852_p13 = pnand %p1851_p12, %p1845_p9 }
  0x77   :  { %1855 = shalt.err (!%p1852_p13)
}
  0x78   :  { %94 = dma.hbm_to_vmem [thread:$0]  %s2141_s6, 48, %s92_s16, [#allocation13]  }
  0x79   :  { %s1856_s27 = scalar_lea.hbm %s2142_s7, 48 }
  0x7a   :  { %p1857_p0 = scmp.ne.s32.totalorder %s2142_s7, %s1856_s27  ;;  %p1860_p1 = scmp.lt.u32.totalorder %s1856_s27, %s2142_s7 }
  0x7c   :  { %p1862_p2 = pnand %p1860_p1, %p1857_p0 }
  0x7e   :  { %1865 = shalt.err (!%p1862_p2)
}
  0x7f   :  { %s1866_s5 = scalar_lea.vmem %s102_s18, 48  ;;  %s1870_s2 = scalar_lea.vmem %s102_s18, 64 }
  0x80   :  { %p1867_p3 = scmp.ne.s32.totalorder %s102_s18, %s1866_s5  ;;  %p1871_p4 = scmp.lt.s32.totalorder %s102_s18, %s102_s18 }
  0x81   :  { %p1872_p5 = scmp.lt.s32.totalorder %s1870_s2, %s1866_s5 }
  0x83   :  { %p1873_p6 = por %p1872_p5, %p1871_p4 }
  0x85   :  { %p1874_p7 = pnand %p1873_p6, %p1867_p3 }
  0x87   :  { %1877 = shalt.err (!%p1874_p7)
}
  0x88   :  { %104 = dma.hbm_to_vmem [thread:$0]  %s2142_s7, 48, %s102_s18, [#allocation16]  }
  0x89   :  { %1900 = dma.done.wait [#allocation4], 128  }
  0x8a   :  { %1901 = vsyncadd [#allocation4], 4294967168 }
  0x8b   :  { %1902 = dma.done.wait [#allocation7], 1152  }
  0x8c   :  { %1903 = vsyncadd [#allocation7], 4294966144 }
  0x8d   :  { %1904 = dma.done.wait [#allocation10], 12352  }
  0x8e   :  { %1905 = vsyncadd [#allocation10], 4294954944 }
  0x8f   :  { %1906 = dma.done.wait [#allocation13], 240  }
  0x90   :  { %1907 = vsyncadd [#allocation13], 4294967056 }
  0x91   :  { %1908 = dma.done.wait [#allocation16], 48  }
  0x92   :  { %1909 = vsyncadd [#allocation16], 4294967248  ;;  %v1924_v0 = vmov 0   ;;  %v1559_v1 = vld [vmem:[#allocation8 + $0x4] ss:$16 sps:$4 sm:$0xff]   ;;  %vm442_vm0 = vcmask 1043456  }
  0x93   :  { %240 = vmatprep.mubr.bf16.mxu1 %v1924_v0  ;;  %484 = vmatprep.mubr.bf16.mxu0 %v1924_v0  ;;  %v1561_v2 = vld [vmem:[#allocation8] ss:$16 sps:$4 sm:$0xff]   ;;  %v1562_v3 = vld [vmem:[#allocation8 + $0x24] ss:$16 sps:$4 sm:$0xff]   ;;  %v1567_v6 = vld [vmem:[#allocation8 + $0xc] ss:$16 sps:$4 sm:$0xff]  }
  0x94   :  { %208 = vmatprep.subr.bf16.mxu1 %v1559_v1  ;;  %v1564_v4 = vld [vmem:[#allocation8 + $0x20] ss:$16 sps:$4 sm:$0xff]   ;;  %v428_v7 = vld [vmem:[#allocation12] sm:$0xff]  ;;  %vm204_vm1 = vcmask 261120   ;;  %v426_v13 = vld [vmem:[#allocation6] sm:$0xff]  ;;  %vm438_vm2 = vcmask 64512  }
  0x95   :  { %209 = vmatpush1.bf16.msra.mxu1 %v1561_v2  ;;  %v132_v5 = vld [vmem:[#allocation3] sm:$0xff]  ;;  %v1565_v9 = vld [vmem:[#allocation8 + $0x8] ss:$16 sps:$4 sm:$0xff]   ;;  %v1375_v10 = vcombine.high %v428_v7, %v428_v7  ;;  %v1374_v11 = vcombine.low %v428_v7, %v428_v7  ;;  %v1570_v14 = vld [vmem:[#allocation8 + $0x2c] ss:$16 sps:$4 sm:$0xff]   ;;  %v427_v16 = vpack.c.bf16 %v426_v13, %v426_v13  ;;  %v1925_v23 = vmov 0.0  }
  0x96   :  { %210 = vmatprep.subr.bf16.mxu1 %v1562_v3  ;;  %v133_v8 = vpack.c.bf16 %v132_v5, %v132_v5  ;;  %v1575_v12 = vld [vmem:[#allocation11 + $0x4] ss:$12 sps:$4 sm:$0xff]   ;;  %v1573_v17 = vld [vmem:[#allocation11] ss:$12 sps:$4 sm:$0xff]   ;;  %v1579_v18 = vld [vmem:[#allocation11 + $0x1c] ss:$12 sps:$4 sm:$0xff]  }
  0x97   :  { %1377 = vmatprep.subr.msk.bf16.mxu0 %vm442_vm0, %v1375_v10  ;;  %v444_v15 = vsel %vm442_vm0, %v1374_v11, 0  ;;  %v1568_v19 = vld [vmem:[#allocation8 + $0x28] ss:$16 sps:$4 sm:$0xff]   ;;  %v1576_v20 = vld [vmem:[#allocation12 + $0x8] ss:$0 sps:$4 sm:$0xff]   ;;  %vm1926_vm3 = vmmov 0  }
  0x98   :  { %453 = vmatpush1.bf16.msra.mxu0 %v444_v15  ;;  %v1577_v21 = vld [vmem:[#allocation11 + $0x18] ss:$12 sps:$4 sm:$0xff]   ;;  %v1582_v22 = vld [vmem:[#allocation11 + $0x34] ss:$12 sps:$4 sm:$0xff]   ;;  %v450_v24 = vsel %vm442_vm0, %v1576_v20, 0  ;;  %s1928_s13 = smov [#allocation17]  }
  0x99   :  { %211 = vmatpush1.bf16.msra.mxu1 %v1564_v4  ;;  %1045 = vmatprep.subr.bf16.mxu0 %v1575_v12  ;;  %v1585_v25 = vld [vmem:[#allocation11 + $0x184] ss:$12 sps:$4 sm:$0xff]   ;;  %v1588_v27 = vld [vmem:[#allocation11 + $0x4c] ss:$12 sps:$4 sm:$0xff]   ;;  %v1586_v28 = vld [vmem:[#allocation11 + $0x48] ss:$12 sps:$4 sm:$0xff]  }
  0x9a   :  { %249 = vmatprep.subr.bf16.mxu1 %v1567_v6  ;;  %v1580_v26 = vld [vmem:[#allocation11 + $0x30] ss:$12 sps:$4 sm:$0xff]   ;;  %v1583_v30 = vld [vmem:[#allocation11 + $0x180] ss:$12 sps:$4 sm:$0xff]   ;;  %v1589_v34 = vld [vmem:[#allocation11 + $0x198] ss:$12 sps:$4 sm:$0xff]  }
  0x9b   :  { %1378 = vmatmul.mubr.msk.bf16.vlgmr.msra.gmra.mrb[0].mxu0 %vm438_vm2, %v427_v16  ;;  %v1594_v29 = vld [vmem:[#allocation11 + $0x64] ss:$12 sps:$4 sm:$0xff]   ;;  %v1591_v31 = vld [vmem:[#allocation11 + $0x19c] ss:$12 sps:$4 sm:$0xff]   ;;  %v1592_v32 = vld [vmem:[#allocation11 + $0x60] ss:$12 sps:$4 sm:$0xff]  }
  0x9c   :  { %1372 = vmatmul.mubr.msk.bf16.vlgmr.msra.gmra.mrb[0].mxu1 %vm204_vm1, %v133_v8  ;;  %1046 = vmatpush1.bf16.msra.mxu0 %v1573_v17  ;;  %v1600_v33 = vld [vmem:[#allocation11 + $0x7c] ss:$12 sps:$4 sm:$0xff]   ;;  %v1597_v35 = vld [vmem:[#allocation11 + $0x1b4] ss:$12 sps:$4 sm:$0xff]   ;;  %v1598_v36 = vld [vmem:[#allocation11 + $0x78] ss:$12 sps:$4 sm:$0xff]  }
  0x9d   :  { %250 = vmatpush1.bf16.msra.mxu1 %v1565_v9  ;;  %281 = vmatprep.mubr.bf16.mxu1 %v1924_v0  ;;  %v1606_v37 = vld [vmem:[#allocation11 + $0x94] ss:$12 sps:$4 sm:$0xff]   ;;  %v1595_v38 = vld [vmem:[#allocation11 + $0x1b0] ss:$12 sps:$4 sm:$0xff]   ;;  %v1603_v39 = vld [vmem:[#allocation11 + $0x1cc] ss:$12 sps:$4 sm:$0xff]  }
  0x9e   :  { %251 = vmatprep.subr.bf16.mxu1 %v1570_v14  ;;  %1047 = vmatprep.subr.bf16.mxu0 %v1579_v18  ;;  %v1604_v40 = vld [vmem:[#allocation11 + $0x90] ss:$12 sps:$4 sm:$0xff]   ;;  %v1612_v41 = vld [vmem:[#allocation11 + $0xac] ss:$12 sps:$4 sm:$0xff]   ;;  %v1601_v42 = vld [vmem:[#allocation11 + $0x1c8] ss:$12 sps:$4 sm:$0xff]  }
  0x9f   :  { %v1609_v43 = vld [vmem:[#allocation11 + $0x1e4] ss:$12 sps:$4 sm:$0xff]   ;;  %v1610_v44 = vld [vmem:[#allocation11 + $0xa8] ss:$12 sps:$4 sm:$0xff]   ;;  %v1607_v46 = vld [vmem:[#allocation11 + $0x1e0] ss:$12 sps:$4 sm:$0xff]  }
  0xa0   :  { %1048 = vmatpush1.bf16.msra.mxu0 %v1577_v21  ;;  %v1618_v45 = vld [vmem:[#allocation11 + $0xc4] ss:$12 sps:$4 sm:$0xff]   ;;  %v1615_v47 = vld [vmem:[#allocation11 + $0x1fc] ss:$12 sps:$4 sm:$0xff]   ;;  %v1616_v49 = vld [vmem:[#allocation11 + $0xc0] ss:$12 sps:$4 sm:$0xff]  }
  0xa1   :  { %252 = vmatpush1.bf16.msra.mxu1 %v1568_v19  ;;  %1049 = vmatprep.subr.bf16.mxu0 %v1582_v22  ;;  %v1613_v48 = vld [vmem:[#allocation11 + $0x1f8] ss:$12 sps:$4 sm:$0xff]   ;;  %v1624_v50 = vld [vmem:[#allocation11 + $0xdc] ss:$12 sps:$4 sm:$0xff]   ;;  %v1621_v51 = vld [vmem:[#allocation11 + $0x214] ss:$12 sps:$4 sm:$0xff]   ;;  %v144_v22 = vlaneseq }
  0xa2   :  { %1525 = vmatprep.subr.bf16.mxu1 %v1925_v23  ;;  %v1622_v52 = vld [vmem:[#allocation11 + $0xd8] ss:$12 sps:$4 sm:$0xff]   ;;  %v1630_v53 = vld [vmem:[#allocation11 + $0xf4] ss:$12 sps:$4 sm:$0xff]   ;;  %v1619_v54 = vld [vmem:[#allocation11 + $0x210] ss:$12 sps:$4 sm:$0xff]  }
  0xa3   :  { %v1627_v55 = vld [vmem:[#allocation11 + $0x22c] ss:$12 sps:$4 sm:$0xff]   ;;  %v1628_v56 = vld [vmem:[#allocation11 + $0xf0] ss:$12 sps:$4 sm:$0xff]   ;;  %v1625_v58 = vld [vmem:[#allocation11 + $0x228] ss:$12 sps:$4 sm:$0xff]  }
  0xa4   :  { %1373 = vmatmul.mubr.msk.bf16.vlgmr.msra.gmra.mrb[4].mxu1 %vm204_vm1, %v133_v8  ;;  %1050 = vmatpush1.bf16.msra.mxu0 %v1580_v26  ;;  %v1636_v57 = vld [vmem:[#allocation11 + $0x10c] ss:$12 sps:$4 sm:$0xff]   ;;  %v1633_v59 = vld [vmem:[#allocation11 + $0x244] ss:$12 sps:$4 sm:$0xff]   ;;  %v1634_v60 = vld [vmem:[#allocation11 + $0x108] ss:$12 sps:$4 sm:$0xff]  }
  0xa5   :  { %1526 = vmatpush3.bf16.msra.mxu1 %v450_v24  ;;  %1527 = vmatprep.mubr.msk.bf16.mxu1 %vm1926_vm3, %v1925_v23  ;;  %v1642_v61 = vld [vmem:[#allocation11 + $0x124] ss:$12 sps:$4 sm:$0xff]   ;;  %v1631_v62 = vld [vmem:[#allocation11 + $0x240] ss:$12 sps:$4 sm:$0xff]   ;;  %v1639_v63 = vld [vmem:[#allocation11 + $0x25c] ss:$12 sps:$4 sm:$0xff]  }
  0xa6   :  { %1086 = vmatprep.subr.bf16.mxu1 %v1585_v25  ;;  %1051 = vmatprep.subr.bf16.mxu0 %v1588_v27  ;;  %v1640_v0 = vld [vmem:[#allocation11 + $0x120] ss:$12 sps:$4 sm:$0xff]   ;;  %v1648_v1 = vld [vmem:[#allocation11 + $0x13c] ss:$12 sps:$4 sm:$0xff]   ;;  %v1637_v2 = vld [vmem:[#allocation11 + $0x258] ss:$12 sps:$4 sm:$0xff]  }
  0xa7   :  { %v1645_v3 = vld [vmem:[#allocation11 + $0x274] ss:$12 sps:$4 sm:$0xff]   ;;  %v1646_v4 = vld [vmem:[#allocation11 + $0x138] ss:$12 sps:$4 sm:$0xff]   ;;  %v1643_v5 = vld [vmem:[#allocation11 + $0x270] ss:$12 sps:$4 sm:$0xff]  }
  0xa8   :  { %1052 = vmatpush1.bf16.msra.mxu0 %v1586_v28  ;;  %v1651_v6 = vld [vmem:[#allocation11 + $0x28c] ss:$12 sps:$4 sm:$0xff]   ;;  %v1649_v7 = vld [vmem:[#allocation11 + $0x288] ss:$12 sps:$4 sm:$0xff]   ;;  %v1657_v9 = vld [vmem:[#allocation11 + $0x2a4] ss:$12 sps:$4 sm:$0xff]  }
  0xa9   :  { %1053 = vmatprep.subr.bf16.mxu0 %v1594_v29  ;;  %v1654_v8 = vld [vmem:[#allocation11 + $0x154] ss:$12 sps:$4 sm:$0xff]   ;;  %v1652_v10 = vld [vmem:[#allocation11 + $0x150] ss:$12 sps:$4 sm:$0xff]   ;;  %v1660_v12 = vld [vmem:[#allocation11 + $0x16c] ss:$12 sps:$4 sm:$0xff]  }
  0xaa   :  { %v1655_v11 = vld [vmem:[#allocation11 + $0x2a0] ss:$12 sps:$4 sm:$0xff]   ;;  %v1663_v13 = vld [vmem:[#allocation11 + $0x2bc] ss:$12 sps:$4 sm:$0xff]   ;;  %v1661_v15 = vld [vmem:[#allocation11 + $0x2b8] ss:$12 sps:$4 sm:$0xff]  }
  0xab   :  { %v1658_v14 = vld [vmem:[#allocation11 + $0x168] ss:$12 sps:$4 sm:$0xff]   ;;  %v1664_v18 = vld [vmem:[#allocation11 + $0x2d0] ss:$12 sps:$4 sm:$0xff]   ;;  %v1671_v19 = vld [vmem:[#allocation11 + $0x2ec] ss:$12 sps:$4 sm:$0xff]  }
  0xac   :  { %1528 = vmatmul.mubr.msk.bf16.vlgmr.msra.gmra.mrb[8].mxu1 %vm438_vm2, %v427_v16  ;;  %1054 = vmatpush1.bf16.msra.mxu0 %v1592_v32  ;;  %v1666_v16 = vld [vmem:[#allocation11 + $0x2d4] ss:$12 sps:$4 sm:$0xff]   ;;  %v2085_v24 = vshrl.u32 %v144_v22, 7  ;;  %v142_v26 = vld [vmem:[#allocation9] sm:$0xf]  ;;  %s1351_s14 = sshll.u32 %s1928_s13, 4  ;;  %s1352_s14 = int_to_ptr.vmem [resolvable:$true] %s1351_s14 }
  0xad   :  { %1087 = vmatpush1.bf16.msra.mxu1 %v1583_v30  ;;  %1055 = vmatprep.subr.bf16.mxu0 %v1600_v33  ;;  %v1667_v17 = vld [vmem:[#allocation11 + $0xc8] ss:$12 sps:$4 sm:$0xff]   ;;  %v1696_v22 = vld [vmem:[#allocation11 + $0xb0] ss:$12 sps:$4 sm:$0xff]   ;;  %vm1343_vm4 = vcmask 57344   ;;  %s1878_s16 = scalar_lea.vmem %s1352_s14, 16  ;;  %p1883_p9 = scmp.lt.s32.totalorder %s1352_s14, %s1352_s14 }
  0xae   :  { %1088 = vmatprep.subr.bf16.mxu1 %v1591_v31  ;;  %v1669_v20 = vld [vmem:[#allocation11 + $0x2e8] ss:$12 sps:$4 sm:$0xff]   ;;  %v146_v25 = vsub.s32 0, %v2085_v24  ;;  %v150_v27 = vsub.s32 1, %v2085_v24  ;;  %v154_v33 = vsub.s32 2, %v2085_v24  ;;  %p1879_p8 = scmp.ne.s32.totalorder %s1352_s14, %s1878_s16  ;;  %s1882_s17 = scalar_lea.vmem %s1352_s14, 32 }
  0xaf   :  { %v1675_v21 = vld [vmem:[#allocation11 + $0x248] ss:$12 sps:$4 sm:$0xff]   ;;  %p1884_p10 = scmp.lt.s32.totalorder %s1882_s17, %s1878_s16 }
  0xb0   :  { %1056 = vmatpush1.bf16.msra.mxu0 %v1598_v36  ;;  %v147_v28 = vrot.slane %v142_v26, %v146_v25  ;;  %v151_v29 = vrot.slane %v142_v26, %v150_v27  ;;  %v158_v36 = vsub.s32 3, %v2085_v24 }
  0xb1   :  { %1089 = vmatpush1.bf16.msra.mxu1 %v1589_v34  ;;  %1057 = vmatprep.subr.bf16.mxu0 %v1606_v37  ;;  %p1885_p11 = por %p1884_p10, %p1883_p9 }
  0xb2   :  { %1090 = vmatprep.subr.bf16.mxu1 %v1597_v35 }
  0xb3   :  { %p1886_p12 = pnand %p1885_p11, %p1879_p8 }
  0xb4   :  { %1058 = vmatpush1.bf16.msra.mxu0 %v1604_v40 }
  0xb5   :  { %1091 = vmatpush1.bf16.msra.mxu1 %v1595_v38  ;;  %1059 = vmatprep.subr.bf16.mxu0 %v1612_v41 }
  0xb6   :  { %1092 = vmatprep.subr.bf16.mxu1 %v1603_v39 }
  0xb8   :  { %1060 = vmatpush1.bf16.msra.mxu0 %v1610_v44 }
  0xb9   :  { %1093 = vmatpush1.bf16.msra.mxu1 %v1601_v42  ;;  %1061 = vmatprep.subr.bf16.mxu0 %v1618_v45 }
  0xba   :  { %1094 = vmatprep.subr.bf16.mxu1 %v1609_v43  ;;  %v155_v43 = vrot.slane %v142_v26, %v154_v33 }
  0xbc   :  { %1062 = vmatpush1.bf16.msra.mxu0 %v1616_v49  ;;  %v1672_v49 = vld [vmem:[#allocation11 + $0xe0] ss:$12 sps:$4 sm:$0xff]  }
  0xbd   :  { %1095 = vmatpush1.bf16.msra.mxu1 %v1607_v46  ;;  %1063 = vmatprep.subr.bf16.mxu0 %v1624_v50  ;;  %v159_v46 = vrot.slane %v142_v26, %v158_v36  ;;  %v1697_v26 = vld [vmem:[#allocation11 + $0x200] ss:$12 sps:$4 sm:$0xff]   ;;  %v1476_v36 = vld.sshfl [vmem:[#allocation15] sm:$0x13 pattern:$0x75316420] }
  0xbe   :  { %1096 = vmatprep.subr.bf16.mxu1 %v1615_v47  ;;  %v1668_v47 = vld [vmem:[#allocation11 + $0x8] ss:$12 sps:$4 sm:$0xff]  }
  0xc0   :  { %1064 = vmatpush1.bf16.msra.mxu0 %v1622_v52 }
  0xc1   :  { %1097 = vmatpush1.bf16.msra.mxu1 %v1613_v48  ;;  %1065 = vmatprep.subr.bf16.mxu0 %v1630_v53 }
  0xc2   :  { %1098 = vmatprep.subr.bf16.mxu1 %v1621_v51 }
  0xc4   :  { %1066 = vmatpush1.bf16.msra.mxu0 %v1628_v56 }
  0xc5   :  { %1099 = vmatpush1.bf16.msra.mxu1 %v1619_v54  ;;  %1067 = vmatprep.subr.bf16.mxu0 %v1636_v57 }
  0xc6   :  { %1100 = vmatprep.subr.bf16.mxu1 %v1627_v55  ;;  %v1673_v55 = vld [vmem:[#allocation11 + $0x20] ss:$12 sps:$4 sm:$0xff]  }
  0xc8   :  { %1068 = vmatpush1.bf16.msra.mxu0 %v1634_v60 }
  0xc9   :  { %1101 = vmatpush1.bf16.msra.mxu1 %v1625_v58  ;;  %1069 = vmatprep.subr.bf16.mxu0 %v1642_v61  ;;  %v1674_v58 = vld [vmem:[#allocation11 + $0xf8] ss:$12 sps:$4 sm:$0xff]  }
  0xca   :  { %1102 = vmatprep.subr.bf16.mxu1 %v1633_v59  ;;  %v1676_v61 = vld [vmem:[#allocation11 + $0x38] ss:$12 sps:$4 sm:$0xff]  }
  0xcc   :  { %1070 = vmatpush1.bf16.msra.mxu0 %v1640_v0  ;;  %v1678_v0 = vld [vmem:[#allocation11 + $0x110] ss:$12 sps:$4 sm:$0xff]  }
  0xcd   :  { %1103 = vmatpush1.bf16.msra.mxu1 %v1631_v62  ;;  %1071 = vmatprep.subr.bf16.mxu0 %v1648_v1  ;;  %v1677_v62 = vld [vmem:[#allocation11 + $0x188] ss:$12 sps:$4 sm:$0xff]   ;;  %v1679_v1 = vld [vmem:[#allocation11 + $0x260] ss:$12 sps:$4 sm:$0xff]  }
  0xce   :  { %1104 = vmatprep.subr.bf16.mxu1 %v1639_v63 }
  0xd0   :  { %1072 = vmatpush1.bf16.msra.mxu0 %v1646_v4  ;;  %v1680_v4 = vld [vmem:[#allocation11 + $0x50] ss:$12 sps:$4 sm:$0xff]  }
  0xd1   :  { %1105 = vmatpush1.bf16.msra.mxu1 %v1637_v2  ;;  %1073 = vmatprep.subr.bf16.mxu0 %v1654_v8  ;;  %v1683_v8 = vld [vmem:[#allocation11 + $0x278] ss:$12 sps:$4 sm:$0xff]  }
  0xd2   :  { %1106 = vmatprep.subr.bf16.mxu1 %v1645_v3 }
  0xd4   :  { %1074 = vmatpush1.bf16.msra.mxu0 %v1652_v10  ;;  %v1684_v10 = vld [vmem:[#allocation11 + $0x68] ss:$12 sps:$4 sm:$0xff]  }
  0xd5   :  { %1107 = vmatpush1.bf16.msra.mxu1 %v1643_v5  ;;  %1075 = vmatprep.subr.bf16.mxu0 %v1660_v12  ;;  %v1681_v5 = vld [vmem:[#allocation11 + $0x1a0] ss:$12 sps:$4 sm:$0xff]  }
  0xd6   :  { %1108 = vmatprep.subr.bf16.mxu1 %v1651_v6  ;;  %v1686_v12 = vld [vmem:[#allocation11 + $0x140] ss:$12 sps:$4 sm:$0xff]  }
  0xd8   :  { %1076 = vmatpush1.bf16.msra.mxu0 %v1658_v14  ;;  %v1688_v14 = vld [vmem:[#allocation11 + $0x80] ss:$12 sps:$4 sm:$0xff]  }
  0xd9   :  { %1109 = vmatpush1.bf16.msra.mxu1 %v1649_v7  ;;  %1479 = vmatprep.subr.bf16.mxu0 %v1667_v17  ;;  %v1682_v7 = vld [vmem:[#allocation11 + $0x128] ss:$12 sps:$4 sm:$0xff]  }
  0xda   :  { %1110 = vmatprep.subr.bf16.mxu1 %v1657_v9  ;;  %v1691_v17 = vld [vmem:[#allocation11 + $0x2a8] ss:$12 sps:$4 sm:$0xff]  }
  0xdd   :  { %1111 = vmatpush1.bf16.msra.mxu1 %v1655_v11  ;;  %v1685_v11 = vld [vmem:[#allocation11 + $0x1b8] ss:$12 sps:$4 sm:$0xff]  }
  0xde   :  { %1112 = vmatprep.subr.bf16.mxu1 %v1663_v13  ;;  %v1687_v13 = vld [vmem:[#allocation11 + $0x290] ss:$12 sps:$4 sm:$0xff]  }
  0xe1   :  { %1113 = vmatpush1.bf16.msra.mxu1 %v1661_v15  ;;  %v1689_v15 = vld [vmem:[#allocation11 + $0x1d0] ss:$12 sps:$4 sm:$0xff]  }
  0xe2   :  { %1114 = vmatprep.subr.bf16.mxu1 %v1666_v16  ;;  %v1690_v16 = vld [vmem:[#allocation11 + $0x158] ss:$12 sps:$4 sm:$0xff]  }
  0xe5   :  { %1115 = vmatpush1.bf16.msra.mxu1 %v1664_v18  ;;  %v1692_v18 = vld [vmem:[#allocation11 + $0x98] ss:$12 sps:$4 sm:$0xff]  }
  0xe6   :  { %1116 = vmatprep.subr.bf16.mxu1 %v1671_v19  ;;  %v1693_v19 = vld [vmem:[#allocation11 + $0x1e8] ss:$12 sps:$4 sm:$0xff]  }
  0xe9   :  { %1117 = vmatpush1.bf16.msra.mxu1 %v1669_v20  ;;  %v1694_v20 = vld [vmem:[#allocation11 + $0x170] ss:$12 sps:$4 sm:$0xff]  }
  0xea   :  { %1501 = vmatprep.subr.bf16.mxu1 %v1675_v21  ;;  %v1695_v21 = vld [vmem:[#allocation11 + $0x2c0] ss:$12 sps:$4 sm:$0xff]  }
 0x16e   :  { %v2095_v37 = vpop.f32.mrb[0].mxu0 }
 0x16f   :  { %v242_v30 = vpop.f32.mrb[0].mxu1  ;;  %v2097_v40 = vpop.f32.mrb[1].mxu0 }
 0x170   :  { %v243_v31 = vadd.f32 %v242_v30, %v147_v28  ;;  %v244_v32 = vpop.f32.mrb[1].mxu1  ;;  %v490_v42 = vpop.f32.mrb[2].mxu0  ;;  %v1698_v28 = vld [vmem:[#allocation11 + $0x2d8] ss:$12 sps:$4 sm:$0xff]   ;;  %v1700_v30 = vld [vmem:[#allocation11 + $0x2f0] ss:$12 sps:$4 sm:$0xff]  }
 0x171   :  { %v245_v34 = vadd.f32 %v244_v32, %v151_v29  ;;  %v246_v35 = vpop.f32.mrb[2].mxu1  ;;  %v491_v44 = vpop.f32.mrb[3].mxu0  ;;  %v1699_v29 = vld [vmem:[#allocation11 + $0x218] ss:$12 sps:$4 sm:$0xff]   ;;  %v1927_v32 = vmov 1966171168  }
 0x172   :  { %v290_v38 = vmax.f32 %v243_v31, 0.0  ;;  %v247_v39 = vpop.f32.mrb[3].mxu1  ;;  %v1701_v31 = vld [vmem:[#allocation11 + $0x230] ss:$12 sps:$4 sm:$0xff]  }
 0x173   :  { %v291_v41 = vmax.f32 %v245_v34, 0.0  ;;  %v1246_v34 = vunpack.c.l.s4 %v1927_v32 }
 0x174   :  { %v2101_v48 = vpack.c.bf16 %v290_v38, %v290_v38  ;;  %v1244_v38 = vcombine.high %v1476_v36, %v1476_v36 }
 0x175   :  { %v295_v45 = vpack.c.bf16 %v291_v41, %v291_v41  ;;  %v1247_v35 = vunpack.c.0.s8 %v1246_v34 }
 0x177   :  { %v283_v50 = vpop.f32.mrb[4].mxu1  ;;  %1077 = vmatprep.mubr.bf16.mxu0 %v295_v45  ;;  %v1250_v39 = vsub.s32 %v1247_v35, %v2085_v24 }
 0x178   :  { %v284_v51 = vadd.f32 %v283_v50, %v155_v43  ;;  %v285_v52 = vpop.f32.mrb[5].mxu1  ;;  %1078 = vmatmul.mubr.bf16.vlgmr.msra.gmra.mrb[4].mxu0 %v2101_v48 }
 0x179   :  { %v286_v53 = vadd.f32 %v285_v52, %v159_v46  ;;  %1480 = vmatpush3.bf16.msra.mxu0 %v1668_v47  ;;  %v287_v54 = vpop.f32.mrb[6].mxu1  ;;  %1159 = vmatprep.mubr.bf16.mxu0 %v295_v45  ;;  %v1258_v41 = vrot.slane %v1244_v38, %v1250_v39  ;;  %v1251_v42 = vrot.slane %v1476_v36, %v1250_v39 }
 0x17a   :  { %v292_v56 = vmax.f32 %v284_v51, 0.0  ;;  %v288_v57 = vpop.f32.mrb[7].mxu1  ;;  %1481 = vmatprep.subr.bf16.mxu0 %v1672_v49  ;;  %v1207_v49 = vld [vmem:[#allocation14] sm:$0x7] }
 0x17b   :  { %v293_v59 = vmax.f32 %v286_v53, 0.0  ;;  %v1212_v50 = vrot.slane %v1207_v49, %v146_v25  ;;  %v1216_v52 = vrot.slane %v1207_v49, %v150_v27 }
 0x17c   :  { %v296_v63 = vpack.c.bf16 %v292_v56, %v292_v56 }
 0x17d   :  { %v297_v60 = vpack.c.bf16 %v293_v59, %v293_v59  ;;  %1482 = vmatpush3.bf16.msra.mxu0 %v1673_v55 }
 0x17e   :  { %1483 = vmatprep.subr.bf16.mxu0 %v1674_v58 }
 0x17f   :  { %1118 = vmatprep.mubr.bf16.mxu1 %v297_v60  ;;  %v2104_v2 = vpop.f32.mrb[8].mxu1 }
 0x180   :  { %1119 = vmatmul.mubr.bf16.vlgmr.msra.gmra.mrb[12].mxu1 %v296_v63  ;;  %v1529_v3 = vpop.f32.mrb[9].mxu1 }
 0x181   :  { %1484 = vmatpush3.bf16.msra.mxu0 %v1676_v61  ;;  %1502 = vmatpush3.bf16.msra.mxu1 %v1677_v62  ;;  %v530_v6 = vpop.f32.mrb[10].mxu1 }
 0x182   :  { %1199 = vmatprep.mubr.bf16.mxu1 %v297_v60  ;;  %1485 = vmatprep.subr.bf16.mxu0 %v1678_v0  ;;  %v1530_v9 = vpop.f32.mrb[11].mxu1  ;;  %v1220_v6 = vrot.slane %v1207_v49, %v154_v33 }
 0x183   :  { %1503 = vmatprep.subr.bf16.mxu1 %v1679_v1 }
 0x185   :  { %1486 = vmatpush3.bf16.msra.mxu0 %v1680_v4  ;;  %1504 = vmatpush3.bf16.msra.mxu1 %v1681_v5 }
 0x186   :  { %1487 = vmatprep.subr.bf16.mxu0 %v1682_v7  ;;  %1505 = vmatprep.subr.bf16.mxu1 %v1683_v8 }
 0x189   :  { %1488 = vmatpush3.bf16.msra.mxu0 %v1684_v10  ;;  %1506 = vmatpush3.bf16.msra.mxu1 %v1685_v11 }
 0x18a   :  { %1489 = vmatprep.subr.bf16.mxu0 %v1686_v12  ;;  %1507 = vmatprep.subr.bf16.mxu1 %v1687_v13  ;;  %v1235_v13 = vstv %s2143_s8 }
 0x18d   :  { %1490 = vmatpush3.bf16.msra.mxu0 %v1688_v14  ;;  %1508 = vmatpush3.bf16.msra.mxu1 %v1689_v15 }
 0x18e   :  { %1491 = vmatprep.subr.bf16.mxu0 %v1690_v16  ;;  %1509 = vmatprep.subr.bf16.mxu1 %v1691_v17 }
 0x191   :  { %1492 = vmatpush3.bf16.msra.mxu0 %v1692_v18  ;;  %1510 = vmatpush3.bf16.msra.mxu1 %v1693_v19 }
 0x192   :  { %1493 = vmatprep.subr.bf16.mxu0 %v1694_v20  ;;  %1511 = vmatprep.subr.bf16.mxu1 %v1695_v21 }
 0x195   :  { %1494 = vmatpush3.bf16.msra.mxu0 %v1696_v22  ;;  %1512 = vmatpush3.bf16.msra.mxu1 %v1697_v26 }
 0x196   :  { %1513 = vmatprep.subr.bf16.mxu1 %v1698_v28 }
 0x198   :  { %1160 = vmatmul.mubr.bf16.vlgmr.msra.gmra.mrb[8].mxu0 %v2101_v48 }
 0x199   :  { %1514 = vmatpush3.bf16.msra.mxu1 %v1699_v29  ;;  %1295 = vmatprep.mubr.bf16.mxu0 %v1258_v41 }
 0x19a   :  { %1515 = vmatprep.subr.bf16.mxu1 %v1700_v30 }
 0x19d   :  { %1516 = vmatpush3.bf16.msra.mxu1 %v1701_v31 }
 0x1a0   :  { %1200 = vmatmul.mubr.bf16.vlgmr.msra.gmra.mrb[16].mxu1 %v296_v63 }
 0x24b   :  { %v1079_v43 = vpop.f32.mrb[4].mxu0 }
 0x24c   :  { %v1080_v44 = vadd.f32 %v1079_v43, %v2095_v37  ;;  %v1081_v45 = vpop.f32.mrb[5].mxu0 }
 0x24d   :  { %v1082_v46 = vadd.f32 %v1081_v45, %v2097_v40  ;;  %v1083_v47 = vpop.f32.mrb[6].mxu0 }
 0x24e   :  { %v1084_v48 = vpop.f32.mrb[7].mxu0 }
 0x253   :  { %v1120_v51 = vpop.f32.mrb[12].mxu1 }
 0x254   :  { %v1121_v53 = vadd.f32 %v1120_v51, %v1080_v44  ;;  %v1122_v54 = vpop.f32.mrb[13].mxu1 }
 0x255   :  { %v1123_v55 = vadd.f32 %v1122_v54, %v1082_v46  ;;  %v1124_v56 = vpop.f32.mrb[14].mxu1 }
 0x256   :  { %v1224_v57 = vadd.f32 %v1212_v50, %v1121_v53  ;;  %v1125_v58 = vpop.f32.mrb[15].mxu1 }
 0x257   :  { %v1225_v37 = vadd.f32 %v1216_v52, %v1123_v55 }
 0x258   :  { %v1227_v59 = vmax.f32 %v1224_v57, 0.0 }
 0x259   :  { %v1228_v60 = vmax.f32 %v1225_v37, 0.0 }
 0x25a   :  { %v1231_v61 = vpack.c.bf16 %v1227_v59, %v1227_v59 }
 0x25b   :  { %v1232_v40 = vpack.c.bf16 %v1228_v60, %v1228_v60 }
 0x25d   :  { %1263 = vmatprep.subr.bf16.mxu0 %v1232_v40 }
 0x25e   :  { %1264 = vmatpush1.bf16.xpose.msra.mxu0 %v1231_v61 }
 0x25f   :  { %1531 = vmatprep.subr.bf16.mxu0 %v1925_v23 }
 0x265   :  { %1296 = vmatmul.mubr.bf16.vlgmr.msra.gmra.mrb[12].mxu0 %v1251_v42 }
 0x266   :  { %1533 = vmatprep.mubr.msk.bf16.mxu0 %vm1926_vm3, %v1925_v23  ;;  %v1259_v23 = vcombine.high %v1251_v42, %v1251_v42 }
 0x26b   :  { %v1495_v25 = vpop.f32.mrb[8].mxu0 }
 0x26c   :  { %v1496_v27 = vpop.f32.mrb[9].mxu0 }
 0x26d   :  { %v1497_v62 = vadd.f32 %v1496_v27, %v1495_v25  ;;  %v1498_v63 = vpop.f32.mrb[10].mxu0 }
 0x26e   :  { %v1499_v0 = vpop.f32.mrb[11].mxu0 }
 0x26f   :  { %v1162_v1 = vadd.f32 %v1497_v62, %v2104_v2 }
 0x273   :  { %v1517_v3 = vpop.f32.mrb[16].mxu1 }
 0x274   :  { %v1518_v4 = vpop.f32.mrb[17].mxu1 }
 0x275   :  { %v1519_v5 = vadd.f32 %v1518_v4, %v1517_v3  ;;  %v1520_v7 = vpop.f32.mrb[18].mxu1 }
 0x276   :  { %v1521_v8 = vpop.f32.mrb[19].mxu1 }
 0x277   :  { %v1202_v9 = vadd.f32 %v1519_v5, %v1162_v1 }
 0x279   :  { %v1226_v10 = vadd.f32 %v1220_v6, %v1202_v9 }
 0x27b   :  { %v1229_v11 = vmax.f32 %v1226_v10, 0.0 }
 0x27d   :  { %v1233_v12 = vpack.c.bf16 %v1229_v11, %v1229_v11 }
 0x27f   :  { %1532 = vmatpush3.bf16.xpose.msra.mxu0 %v1233_v12 }
 0x286   :  { %1534 = vmatmul.mubr.bf16.vlgmr.msra.gmra.mrb[12].mxu0 %v1259_v23 }
 0x359   :  { %v1337_v2 = vpop.f32.mrb[12].mxu0 }
 0x35a   :  { %v1537_v14 = vadd.f32 %v1337_v2, %v1235_v13  ;;  %v1535_v24 = vpop.f32.mrb[13].mxu0 }
 0x35b   :  { %v1340_v33 = vpop.f32.mrb[14].mxu0 }
 0x35c   :  { %v1536_v15 = vpop.f32.mrb[15].mxu0  ;;  %1344 = vst.msk [vmem:[#allocation17] sm:$0x1] %vm1343_vm4, %v1537_v14 }
 0x35d   :  { %1889 = shalt.err (!%p1886_p12)
}
 0x35e   :  { %s1890_s19 = scalar_lea.hbm %s2144_s9, 16 }
 0x35f   :  { %p1891_p13 = scmp.ne.s32.totalorder %s2144_s9, %s1890_s19  ;;  %p1894_p0 = scmp.lt.u32.totalorder %s1890_s19, %s2144_s9 }
 0x361   :  { %p1896_p1 = pnand %p1894_p0, %p1891_p13 }
 0x363   :  { %1899 = shalt.err (!%p1896_p1)
}
 0x364   :  { %1354 = dma.vmem_to_hbm [thread:$0]  %s1352_s14, 16, %s2144_s9, [#allocation5]  }
 0x365   :  { %1910 = dma.done.wait [#allocation5], 16  }
 0x366   :  { %1911 = vsyncadd [#allocation5], 4294967280 }
 0x367   :  { %1358 = vsyncpa [#allocation4], 1 }
 0x368   :  { %1359 = vsyncpa [#allocation7], 1 }
 0x369   :  { %1360 = vsyncpa [#allocation10], 1 }
 0x36a   :  { %1361 = vsyncpa [#allocation13], 1 }
 0x36b   :  { %1362 = vsyncpa [#allocation16], 1 }
 0x36c   :  { %1363 = vsyncpa [#allocation5], 1 }

</bundles_post_ra>
